<compile_context>
chip_gen: v7x
topology: tpu7x:2x2x1
jax: 0.10.0
libtpu: 0.0.40
codegen_flags: <defaults>
</compile_context>

<pallas_src>
import jax
import jax.numpy as jnp
from jax.experimental import pallas as pl
from jax.experimental.pallas import tpu as pltpu


def _bilstm_kernel(x_ref, wih_cat_ref, whh_f_ref, b_f_ref, b_b_ref,
                   wout_f_ref, wout_b_ref, bout_ref, out_ref):
    H = whh_f_ref.shape[0]
    H4 = 4 * H
    Bb = out_ref.shape[0]

    if x_ref.ndim == 3:
        # Batch-grid path: (T, Bb, D) with Bb a multiple of 8, so collapsing
        # the leading time axis is layout-trivial (whole 8-sublane tiles).
        T = x_ref.shape[0]
        x2 = x_ref[...].reshape(T * Bb, x_ref.shape[2])
    else:
        # Grid-free path: x pre-flattened to (T*Bb, D), rows in (t, b) order.
        T = x_ref.shape[0] // Bb
        x2 = x_ref[...]

    # One wide MXU pass hoists ALL input projections out of the recurrence:
    # (T*Bb, D) @ (D, 8H) -> columns [fwd i|f|o|g | bwd i|f|o|g].
    x_proj = jnp.dot(x2, wih_cat_ref[...], preferred_element_type=jnp.float32)

    whh_f = whh_f_ref[...]                      # (H, 4H), gate order i|f|o|g
    b_f = b_f_ref[...]                          # (1, 4H)

    h = jnp.zeros((Bb, H), jnp.float32)
    c = jnp.zeros((Bb, H), jnp.float32)

    def sigmoid(z):
        # Denominator >= 1, so the approximate EUP reciprocal is well behaved.
        return pl.reciprocal(1.0 + jnp.exp(-z), approx=True)

    # Forward recurrence, statically unrolled (T is small and fixed).
    # TODO(synk): for long T switch to lax.fori_loop over x_proj with (h, c)
    # carries (small unroll factor) to keep vreg live ranges bounded.
    for t in range(T):
        gates = (x_proj[t * Bb:(t + 1) * Bb, 0:H4]
                 + jnp.dot(h, whh_f, preferred_element_type=jnp.float32)
                 + b_f)
        sig = sigmoid(gates[:, 0:3 * H])         # one EUP push over i|f|o
        g = jnp.tanh(gates[:, 3 * H:H4])
        c = sig[:, H:2 * H] * c + sig[:, 0:H] * g      # f*c + i*g
        h = sig[:, 2 * H:3 * H] * jnp.tanh(c)          # o*tanh(c)
    h_fwd = h

    # Reverse direction: r_out[:, -1, H:] is the reverse LSTM's FIRST step
    # from the zero state -> no h @ w_hh matmul and no f * c0 term.
    gates_b = x_proj[(T - 1) * Bb:T * Bb, H4:2 * H4] + b_b_ref[...]
    sig_b = sigmoid(gates_b[:, 0:3 * H])
    g_b = jnp.tanh(gates_b[:, 3 * H:H4])
    c_b = sig_b[:, 0:H] * g_b                          # i*g   (c0 == 0)
    h_bwd = sig_b[:, 2 * H:3 * H] * jnp.tanh(c_b)      # o*tanh(c)

    # Linear(2H -> 1) head: VPU multiply + lane reduction instead of two
    # width-1 MXU matmuls.
    out = (jnp.sum(h_fwd * wout_f_ref[...], axis=-1, keepdims=True)
           + jnp.sum(h_bwd * wout_b_ref[...], axis=-1, keepdims=True)
           + bout_ref[...])
    out_ref[...] = out.astype(out_ref.dtype)


def _reorder_gates(w, axis=-1):
    """Permute PyTorch (i, f, g, o) gate blocks along `axis` to (i, f, o, g)."""
    i, f, g, o = jnp.split(w, 4, axis=axis)
    return jnp.concatenate([i, f, o, g], axis=axis)


def bilstm_forward(x, w_ih_f, w_hh_f, b_ih_f, b_hh_f,
                   w_ih_b, w_hh_b, b_ih_b, b_hh_b, w_out, b_out,
                   block_b=8):
    """x: (B, T, D) float32; weights in PyTorch nn.LSTM / nn.Linear layout."""
    B, T, D = x.shape
    H = w_hh_f.shape[1]
    H4 = 4 * H

    # Host-side weight prep: transpose, reorder gates to (i,f,o,g), pre-sum
    # biases, concatenate fwd/bwd input weights into one (D, 8H) matrix.
    wih_cat = jnp.concatenate([_reorder_gates(w_ih_f.T),
                               _reorder_gates(w_ih_b.T)], axis=-1)   # (D, 8H)
    whh_f = _reorder_gates(w_hh_f.T)                                 # (H, 4H)
    b_f = _reorder_gates(b_ih_f + b_hh_f).reshape(1, H4)             # (1, 4H)
    b_b = _reorder_gates(b_ih_b + b_hh_b).reshape(1, H4)             # (1, 4H)
    wout_f = w_out[:, :H].reshape(1, H)
    wout_b = w_out[:, H:].reshape(1, H)
    bout = b_out.reshape(1, 1)
    weights = (wih_cat, whh_f, b_f, b_b, wout_f, wout_b, bout)
    # TODO(synk): optionally cast weights (and x) to bfloat16 to halve the
    # weight DMA once callers accept the extra numeric drift.

    x_tm = jnp.swapaxes(x, 0, 1)                                     # (T, B, D)

    if B >= 16 and B % block_b == 0 and block_b % 8 == 0:
        # Batch grid: blocks of `block_b` rows, batch axis marked parallel so
        # it shards across both TensorCores on v7x.
        def const_spec(shape):
            return pl.BlockSpec(shape, lambda j, _s=shape: (0,) * len(_s))

        in_specs = ([pl.BlockSpec((T, block_b, D), lambda j: (0, j, 0))]
                    + [const_spec(w.shape) for w in weights])
        return pl.pallas_call(
            _bilstm_kernel,
            out_shape=jax.ShapeDtypeStruct((B, 1), jnp.float32),
            grid=(B // block_b,),
            in_specs=in_specs,
            out_specs=pl.BlockSpec((block_b, 1), lambda j: (j, 0)),
            compiler_params=pltpu.CompilerParams(
                dimension_semantics=("parallel",)),
        )(x_tm, *weights)

    # Small-batch path: single grid-free call, everything resident in VMEM;
    # x is pre-flattened to (T*B, D) in (t, b) row order.
    vmem = pl.BlockSpec(memory_space=pltpu.MemorySpace.VMEM)
    return pl.pallas_call(
        _bilstm_kernel,
        out_shape=jax.ShapeDtypeStruct((B, 1), jnp.float32),
        in_specs=[vmem] * (1 + len(weights)),
        out_specs=vmem,
    )(x_tm.reshape(T * B, D), *weights)


# ----------------------------------------------------------------------------
# Pure-JAX full bidirectional LSTM + Linear head reference (mirrors PyTorch).
# ----------------------------------------------------------------------------
def _ref_sigmoid(z):
    return 1.0 / (1.0 + jnp.exp(-z))


def _ref_lstm_cell(x_t, h, c, w_ih, w_hh, b_ih, b_hh):
    H = h.shape[-1]
    gates = x_t @ w_ih.T + h @ w_hh.T + b_ih + b_hh
    i = _ref_sigmoid(gates[:, 0 * H:1 * H])
    f = _ref_sigmoid(gates[:, 1 * H:2 * H])
    g = jnp.tanh(gates[:, 2 * H:3 * H])
    o = _ref_sigmoid(gates[:, 3 * H:4 * H])
    c_new = f * c + i * g
    return o * jnp.tanh(c_new), c_new


def _bilstm_ref(x, w_ih_f, w_hh_f, b_ih_f, b_hh_f,
                w_ih_b, w_hh_b, b_ih_b, b_hh_b, w_out, b_out):
    B, T, D = x.shape
    H = w_hh_f.shape[1]
    h0 = jnp.zeros((B, H), jnp.float32)
    c0 = jnp.zeros((B, H), jnp.float32)
    x_tm = jnp.swapaxes(x, 0, 1)                    # (T, B, D)

    def direction(xs, w_ih, w_hh, b_ih, b_hh):
        def step(carry, x_t):
            h, c = _ref_lstm_cell(x_t, carry[0], carry[1], w_ih, w_hh, b_ih, b_hh)
            return (h, c), h
        _, hs = jax.lax.scan(step, (h0, c0), xs)
        return hs                                   # (T, B, H) in scan order

    hs_f = direction(x_tm, w_ih_f, w_hh_f, b_ih_f, b_hh_f)         # forward
    hs_b = direction(x_tm[::-1], w_ih_b, w_hh_b, b_ih_b, b_hh_b)   # reversed
    # r_out[:, -1] = concat(fwd hidden at t=T-1, reverse hidden at t=T-1); the
    # reverse hidden at t=T-1 is the first element of the reverse scan.
    r_last = jnp.concatenate([hs_f[-1], hs_b[0]], axis=1)          # (B, 2H)
    return r_last @ w_out.T + b_out[None, :]


if __name__ == "__main__":
    H, D, T = 64, 16, 8
    key = jax.random.PRNGKey(0)
    keys = jax.random.split(key, 12)
    k = 1.0 / (H ** 0.5)

    def u(kk, shape):
        return jax.random.uniform(kk, shape, jnp.float32, -k, k)

    w_ih_f = u(keys[1], (4 * H, D))
    w_hh_f = u(keys[2], (4 * H, H))
    b_ih_f = u(keys[3], (4 * H,))
    b_hh_f = u(keys[4], (4 * H,))
    w_ih_b = u(keys[5], (4 * H, D))
    w_hh_b = u(keys[6], (4 * H, H))
    b_ih_b = u(keys[7], (4 * H,))
    b_hh_b = u(keys[8], (4 * H,))
    w_out = u(keys[9], (1, 2 * H))
    b_out = u(keys[10], (1,))
    weights = (w_ih_f, w_hh_f, b_ih_f, b_hh_f,
               w_ih_b, w_hh_b, b_ih_b, b_hh_b, w_out, b_out)

    # Small batch (matches the PyTorch example scale): grid-free path.
    B = 2
    x = jax.random.normal(keys[0], (B, T, D), jnp.float32)
    out = jax.block_until_ready(bilstm_forward(x, *weights))
    ref = _bilstm_ref(x, *weights)
    assert out.shape == (B, 1), out.shape
    # Approx-reciprocal sigmoid in the kernel => slightly looser tolerance.
    err = jnp.max(jnp.abs(out - ref))
    assert err < 2e-2, (err, out, ref)

    # Larger batch exercises the parallel batch grid (both TCs on v7x).
    B2 = 16
    x2 = jax.random.normal(keys[11], (B2, T, D), jnp.float32)
    out2 = jax.block_until_ready(bilstm_forward(x2, *weights))
    ref2 = _bilstm_ref(x2, *weights)
    assert out2.shape == (B2, 1), out2.shape
    err2 = jnp.max(jnp.abs(out2 - ref2))
    assert err2 < 2e-2, (err2, out2, ref2)

    print("KERNEL_OK")
</pallas_src>

<mosaic_0001>
module attributes {stable_mosaic.version = 11 : i64} {
  func.func @_bilstm_kernel(%arg0: memref<16x16xf32, #tpu.memory_space<vmem>>, %arg1: memref<16x512xf32, #tpu.memory_space<vmem>>, %arg2: memref<64x256xf32, #tpu.memory_space<vmem>>, %arg3: memref<1x256xf32, #tpu.memory_space<vmem>>, %arg4: memref<1x256xf32, #tpu.memory_space<vmem>>, %arg5: memref<1x64xf32, #tpu.memory_space<vmem>>, %arg6: memref<1x64xf32, #tpu.memory_space<vmem>>, %arg7: memref<1x1xf32, #tpu.memory_space<vmem>>, %arg8: memref<2x1xf32, #tpu.memory_space<vmem>>) attributes {dimension_semantics = [], scalar_prefetch = 0 : i64, scratch_operands = 0 : i64, tpu.core_type = #tpu.core_type<tc>} {
    %c0 = arith.constant 0 : index
    %c0_0 = arith.constant 0 : index
    %0 = vector.load %arg0[%c0, %c0_0] : memref<16x16xf32, #tpu.memory_space<vmem>>, vector<16x16xf32>
    %c0_1 = arith.constant 0 : index
    %c0_2 = arith.constant 0 : index
    %1 = vector.load %arg1[%c0_1, %c0_2] : memref<16x512xf32, #tpu.memory_space<vmem>>, vector<16x512xf32>
    %cst = arith.constant dense<0.000000e+00> : vector<16x512xf32>
    %2 = tpu.matmul %0, %1, %cst {dimension_numbers = #tpu.dot_dimension_numbers<[1], [0], [0], [1], [0, 0, 1, 1], [], []>} : vector<16x16xf32>, vector<16x512xf32>, vector<16x512xf32> -> vector<16x512xf32>
    %c0_3 = arith.constant 0 : index
    %c0_4 = arith.constant 0 : index
    %3 = vector.load %arg2[%c0_3, %c0_4] : memref<64x256xf32, #tpu.memory_space<vmem>>, vector<64x256xf32>
    %c0_5 = arith.constant 0 : index
    %c0_6 = arith.constant 0 : index
    %4 = vector.load %arg3[%c0_5, %c0_6] : memref<1x256xf32, #tpu.memory_space<vmem>>, vector<1x256xf32>
    %cst_7 = arith.constant 0.000000e+00 : f32
    %5 = vector.broadcast %cst_7 : f32 to vector<2x64xf32>
    %cst_8 = arith.constant 0.000000e+00 : f32
    %6 = vector.broadcast %cst_8 : f32 to vector<2x64xf32>
    %7 = vector.extract_strided_slice %2 {offsets = [0, 0], sizes = [2, 256], strides = [1, 1]} : vector<16x512xf32> to vector<2x256xf32>
    %cst_9 = arith.constant dense<0.000000e+00> : vector<2x256xf32>
    %8 = tpu.matmul %5, %3, %cst_9 {dimension_numbers = #tpu.dot_dimension_numbers<[1], [0], [0], [1], [0, 0, 1, 1], [], []>} : vector<2x64xf32>, vector<64x256xf32>, vector<2x256xf32> -> vector<2x256xf32>
    %9 = arith.addf %7, %8 : vector<2x256xf32>
    %10 = vector.broadcast %4 : vector<1x256xf32> to vector<2x256xf32>
    %11 = arith.addf %9, %10 : vector<2x256xf32>
    %12 = vector.extract_strided_slice %11 {offsets = [0, 0], sizes = [2, 192], strides = [1, 1]} : vector<2x256xf32> to vector<2x192xf32>
    %cst_10 = arith.constant 0.000000e+00 : f32
    %13 = vector.broadcast %cst_10 : f32 to vector<2x192xf32>
    %14 = arith.subf %13, %12 : vector<2x192xf32>
    %15 = math.exp %14 : vector<2x192xf32>
    %cst_11 = arith.constant 1.000000e+00 : f32
    %16 = vector.broadcast %cst_11 : f32 to vector<2x192xf32>
    %17 = arith.addf %16, %15 : vector<2x192xf32>
    %18 = tpu.reciprocal %17 {approx = true} : vector<2x192xf32> -> vector<2x192xf32>
    %19 = vector.extract_strided_slice %11 {offsets = [0, 192], sizes = [2, 64], strides = [1, 1]} : vector<2x256xf32> to vector<2x64xf32>
    %20 = math.tanh %19 : vector<2x64xf32>
    %21 = vector.extract_strided_slice %18 {offsets = [0, 64], sizes = [2, 64], strides = [1, 1]} : vector<2x192xf32> to vector<2x64xf32>
    %22 = arith.mulf %21, %6 : vector<2x64xf32>
    %23 = vector.extract_strided_slice %18 {offsets = [0, 0], sizes = [2, 64], strides = [1, 1]} : vector<2x192xf32> to vector<2x64xf32>
    %24 = arith.mulf %23, %20 : vector<2x64xf32>
    %25 = arith.addf %22, %24 : vector<2x64xf32>
    %26 = vector.extract_strided_slice %18 {offsets = [0, 128], sizes = [2, 64], strides = [1, 1]} : vector<2x192xf32> to vector<2x64xf32>
    %27 = math.tanh %25 : vector<2x64xf32>
    %28 = arith.mulf %26, %27 : vector<2x64xf32>
    %29 = vector.extract_strided_slice %2 {offsets = [2, 0], sizes = [2, 256], strides = [1, 1]} : vector<16x512xf32> to vector<2x256xf32>
    %cst_12 = arith.constant dense<0.000000e+00> : vector<2x256xf32>
    %30 = tpu.matmul %28, %3, %cst_12 {dimension_numbers = #tpu.dot_dimension_numbers<[1], [0], [0], [1], [0, 0, 1, 1], [], []>} : vector<2x64xf32>, vector<64x256xf32>, vector<2x256xf32> -> vector<2x256xf32>
    %31 = arith.addf %29, %30 : vector<2x256xf32>
    %32 = vector.broadcast %4 : vector<1x256xf32> to vector<2x256xf32>
    %33 = arith.addf %31, %32 : vector<2x256xf32>
    %34 = vector.extract_strided_slice %33 {offsets = [0, 0], sizes = [2, 192], strides = [1, 1]} : vector<2x256xf32> to vector<2x192xf32>
    %cst_13 = arith.constant 0.000000e+00 : f32
    %35 = vector.broadcast %cst_13 : f32 to vector<2x192xf32>
    %36 = arith.subf %35, %34 : vector<2x192xf32>
    %37 = math.exp %36 : vector<2x192xf32>
    %cst_14 = arith.constant 1.000000e+00 : f32
    %38 = vector.broadcast %cst_14 : f32 to vector<2x192xf32>
    %39 = arith.addf %38, %37 : vector<2x192xf32>
    %40 = tpu.reciprocal %39 {approx = true} : vector<2x192xf32> -> vector<2x192xf32>
    %41 = vector.extract_strided_slice %33 {offsets = [0, 192], sizes = [2, 64], strides = [1, 1]} : vector<2x256xf32> to vector<2x64xf32>
    %42 = math.tanh %41 : vector<2x64xf32>
    %43 = vector.extract_strided_slice %40 {offsets = [0, 64], sizes = [2, 64], strides = [1, 1]} : vector<2x192xf32> to vector<2x64xf32>
    %44 = arith.mulf %43, %25 : vector<2x64xf32>
    %45 = vector.extract_strided_slice %40 {offsets = [0, 0], sizes = [2, 64], strides = [1, 1]} : vector<2x192xf32> to vector<2x64xf32>
    %46 = arith.mulf %45, %42 : vector<2x64xf32>
    %47 = arith.addf %44, %46 : vector<2x64xf32>
    %48 = vector.extract_strided_slice %40 {offsets = [0, 128], sizes = [2, 64], strides = [1, 1]} : vector<2x192xf32> to vector<2x64xf32>
    %49 = math.tanh %47 : vector<2x64xf32>
    %50 = arith.mulf %48, %49 : vector<2x64xf32>
    %51 = vector.extract_strided_slice %2 {offsets = [4, 0], sizes = [2, 256], strides = [1, 1]} : vector<16x512xf32> to vector<2x256xf32>
    %cst_15 = arith.constant dense<0.000000e+00> : vector<2x256xf32>
    %52 = tpu.matmul %50, %3, %cst_15 {dimension_numbers = #tpu.dot_dimension_numbers<[1], [0], [0], [1], [0, 0, 1, 1], [], []>} : vector<2x64xf32>, vector<64x256xf32>, vector<2x256xf32> -> vector<2x256xf32>
    %53 = arith.addf %51, %52 : vector<2x256xf32>
    %54 = vector.broadcast %4 : vector<1x256xf32> to vector<2x256xf32>
    %55 = arith.addf %53, %54 : vector<2x256xf32>
    %56 = vector.extract_strided_slice %55 {offsets = [0, 0], sizes = [2, 192], strides = [1, 1]} : vector<2x256xf32> to vector<2x192xf32>
    %cst_16 = arith.constant 0.000000e+00 : f32
    %57 = vector.broadcast %cst_16 : f32 to vector<2x192xf32>
    %58 = arith.subf %57, %56 : vector<2x192xf32>
    %59 = math.exp %58 : vector<2x192xf32>
    %cst_17 = arith.constant 1.000000e+00 : f32
    %60 = vector.broadcast %cst_17 : f32 to vector<2x192xf32>
    %61 = arith.addf %60, %59 : vector<2x192xf32>
    %62 = tpu.reciprocal %61 {approx = true} : vector<2x192xf32> -> vector<2x192xf32>
    %63 = vector.extract_strided_slice %55 {offsets = [0, 192], sizes = [2, 64], strides = [1, 1]} : vector<2x256xf32> to vector<2x64xf32>
    %64 = math.tanh %63 : vector<2x64xf32>
    %65 = vector.extract_strided_slice %62 {offsets = [0, 64], sizes = [2, 64], strides = [1, 1]} : vector<2x192xf32> to vector<2x64xf32>
    %66 = arith.mulf %65, %47 : vector<2x64xf32>
    %67 = vector.extract_strided_slice %62 {offsets = [0, 0], sizes = [2, 64], strides = [1, 1]} : vector<2x192xf32> to vector<2x64xf32>
    %68 = arith.mulf %67, %64 : vector<2x64xf32>
    %69 = arith.addf %66, %68 : vector<2x64xf32>
    %70 = vector.extract_strided_slice %62 {offsets = [0, 128], sizes = [2, 64], strides = [1, 1]} : vector<2x192xf32> to vector<2x64xf32>
    %71 = math.tanh %69 : vector<2x64xf32>
    %72 = arith.mulf %70, %71 : vector<2x64xf32>
    %73 = vector.extract_strided_slice %2 {offsets = [6, 0], sizes = [2, 256], strides = [1, 1]} : vector<16x512xf32> to vector<2x256xf32>
    %cst_18 = arith.constant dense<0.000000e+00> : vector<2x256xf32>
    %74 = tpu.matmul %72, %3, %cst_18 {dimension_numbers = #tpu.dot_dimension_numbers<[1], [0], [0], [1], [0, 0, 1, 1], [], []>} : vector<2x64xf32>, vector<64x256xf32>, vector<2x256xf32> -> vector<2x256xf32>
    %75 = arith.addf %73, %74 : vector<2x256xf32>
    %76 = vector.broadcast %4 : vector<1x256xf32> to vector<2x256xf32>
    %77 = arith.addf %75, %76 : vector<2x256xf32>
    %78 = vector.extract_strided_slice %77 {offsets = [0, 0], sizes = [2, 192], strides = [1, 1]} : vector<2x256xf32> to vector<2x192xf32>
    %cst_19 = arith.constant 0.000000e+00 : f32
    %79 = vector.broadcast %cst_19 : f32 to vector<2x192xf32>
    %80 = arith.subf %79, %78 : vector<2x192xf32>
    %81 = math.exp %80 : vector<2x192xf32>
    %cst_20 = arith.constant 1.000000e+00 : f32
    %82 = vector.broadcast %cst_20 : f32 to vector<2x192xf32>
    %83 = arith.addf %82, %81 : vector<2x192xf32>
    %84 = tpu.reciprocal %83 {approx = true} : vector<2x192xf32> -> vector<2x192xf32>
    %85 = vector.extract_strided_slice %77 {offsets = [0, 192], sizes = [2, 64], strides = [1, 1]} : vector<2x256xf32> to vector<2x64xf32>
    %86 = math.tanh %85 : vector<2x64xf32>
    %87 = vector.extract_strided_slice %84 {offsets = [0, 64], sizes = [2, 64], strides = [1, 1]} : vector<2x192xf32> to vector<2x64xf32>
    %88 = arith.mulf %87, %69 : vector<2x64xf32>
    %89 = vector.extract_strided_slice %84 {offsets = [0, 0], sizes = [2, 64], strides = [1, 1]} : vector<2x192xf32> to vector<2x64xf32>
    %90 = arith.mulf %89, %86 : vector<2x64xf32>
    %91 = arith.addf %88, %90 : vector<2x64xf32>
    %92 = vector.extract_strided_slice %84 {offsets = [0, 128], sizes = [2, 64], strides = [1, 1]} : vector<2x192xf32> to vector<2x64xf32>
    %93 = math.tanh %91 : vector<2x64xf32>
    %94 = arith.mulf %92, %93 : vector<2x64xf32>
    %95 = vector.extract_strided_slice %2 {offsets = [8, 0], sizes = [2, 256], strides = [1, 1]} : vector<16x512xf32> to vector<2x256xf32>
    %cst_21 = arith.constant dense<0.000000e+00> : vector<2x256xf32>
    %96 = tpu.matmul %94, %3, %cst_21 {dimension_numbers = #tpu.dot_dimension_numbers<[1], [0], [0], [1], [0, 0, 1, 1], [], []>} : vector<2x64xf32>, vector<64x256xf32>, vector<2x256xf32> -> vector<2x256xf32>
    %97 = arith.addf %95, %96 : vector<2x256xf32>
    %98 = vector.broadcast %4 : vector<1x256xf32> to vector<2x256xf32>
    %99 = arith.addf %97, %98 : vector<2x256xf32>
    %100 = vector.extract_strided_slice %99 {offsets = [0, 0], sizes = [2, 192], strides = [1, 1]} : vector<2x256xf32> to vector<2x192xf32>
    %cst_22 = arith.constant 0.000000e+00 : f32
    %101 = vector.broadcast %cst_22 : f32 to vector<2x192xf32>
    %102 = arith.subf %101, %100 : vector<2x192xf32>
    %103 = math.exp %102 : vector<2x192xf32>
    %cst_23 = arith.constant 1.000000e+00 : f32
    %104 = vector.broadcast %cst_23 : f32 to vector<2x192xf32>
    %105 = arith.addf %104, %103 : vector<2x192xf32>
    %106 = tpu.reciprocal %105 {approx = true} : vector<2x192xf32> -> vector<2x192xf32>
    %107 = vector.extract_strided_slice %99 {offsets = [0, 192], sizes = [2, 64], strides = [1, 1]} : vector<2x256xf32> to vector<2x64xf32>
    %108 = math.tanh %107 : vector<2x64xf32>
    %109 = vector.extract_strided_slice %106 {offsets = [0, 64], sizes = [2, 64], strides = [1, 1]} : vector<2x192xf32> to vector<2x64xf32>
    %110 = arith.mulf %109, %91 : vector<2x64xf32>
    %111 = vector.extract_strided_slice %106 {offsets = [0, 0], sizes = [2, 64], strides = [1, 1]} : vector<2x192xf32> to vector<2x64xf32>
    %112 = arith.mulf %111, %108 : vector<2x64xf32>
    %113 = arith.addf %110, %112 : vector<2x64xf32>
    %114 = vector.extract_strided_slice %106 {offsets = [0, 128], sizes = [2, 64], strides = [1, 1]} : vector<2x192xf32> to vector<2x64xf32>
    %115 = math.tanh %113 : vector<2x64xf32>
    %116 = arith.mulf %114, %115 : vector<2x64xf32>
    %117 = vector.extract_strided_slice %2 {offsets = [10, 0], sizes = [2, 256], strides = [1, 1]} : vector<16x512xf32> to vector<2x256xf32>
    %cst_24 = arith.constant dense<0.000000e+00> : vector<2x256xf32>
    %118 = tpu.matmul %116, %3, %cst_24 {dimension_numbers = #tpu.dot_dimension_numbers<[1], [0], [0], [1], [0, 0, 1, 1], [], []>} : vector<2x64xf32>, vector<64x256xf32>, vector<2x256xf32> -> vector<2x256xf32>
    %119 = arith.addf %117, %118 : vector<2x256xf32>
    %120 = vector.broadcast %4 : vector<1x256xf32> to vector<2x256xf32>
    %121 = arith.addf %119, %120 : vector<2x256xf32>
    %122 = vector.extract_strided_slice %121 {offsets = [0, 0], sizes = [2, 192], strides = [1, 1]} : vector<2x256xf32> to vector<2x192xf32>
    %cst_25 = arith.constant 0.000000e+00 : f32
    %123 = vector.broadcast %cst_25 : f32 to vector<2x192xf32>
    %124 = arith.subf %123, %122 : vector<2x192xf32>
    %125 = math.exp %124 : vector<2x192xf32>
    %cst_26 = arith.constant 1.000000e+00 : f32
    %126 = vector.broadcast %cst_26 : f32 to vector<2x192xf32>
    %127 = arith.addf %126, %125 : vector<2x192xf32>
    %128 = tpu.reciprocal %127 {approx = true} : vector<2x192xf32> -> vector<2x192xf32>
    %129 = vector.extract_strided_slice %121 {offsets = [0, 192], sizes = [2, 64], strides = [1, 1]} : vector<2x256xf32> to vector<2x64xf32>
    %130 = math.tanh %129 : vector<2x64xf32>
    %131 = vector.extract_strided_slice %128 {offsets = [0, 64], sizes = [2, 64], strides = [1, 1]} : vector<2x192xf32> to vector<2x64xf32>
    %132 = arith.mulf %131, %113 : vector<2x64xf32>
    %133 = vector.extract_strided_slice %128 {offsets = [0, 0], sizes = [2, 64], strides = [1, 1]} : vector<2x192xf32> to vector<2x64xf32>
    %134 = arith.mulf %133, %130 : vector<2x64xf32>
    %135 = arith.addf %132, %134 : vector<2x64xf32>
    %136 = vector.extract_strided_slice %128 {offsets = [0, 128], sizes = [2, 64], strides = [1, 1]} : vector<2x192xf32> to vector<2x64xf32>
    %137 = math.tanh %135 : vector<2x64xf32>
    %138 = arith.mulf %136, %137 : vector<2x64xf32>
    %139 = vector.extract_strided_slice %2 {offsets = [12, 0], sizes = [2, 256], strides = [1, 1]} : vector<16x512xf32> to vector<2x256xf32>
    %cst_27 = arith.constant dense<0.000000e+00> : vector<2x256xf32>
    %140 = tpu.matmul %138, %3, %cst_27 {dimension_numbers = #tpu.dot_dimension_numbers<[1], [0], [0], [1], [0, 0, 1, 1], [], []>} : vector<2x64xf32>, vector<64x256xf32>, vector<2x256xf32> -> vector<2x256xf32>
    %141 = arith.addf %139, %140 : vector<2x256xf32>
    %142 = vector.broadcast %4 : vector<1x256xf32> to vector<2x256xf32>
    %143 = arith.addf %141, %142 : vector<2x256xf32>
    %144 = vector.extract_strided_slice %143 {offsets = [0, 0], sizes = [2, 192], strides = [1, 1]} : vector<2x256xf32> to vector<2x192xf32>
    %cst_28 = arith.constant 0.000000e+00 : f32
    %145 = vector.broadcast %cst_28 : f32 to vector<2x192xf32>
    %146 = arith.subf %145, %144 : vector<2x192xf32>
    %147 = math.exp %146 : vector<2x192xf32>
    %cst_29 = arith.constant 1.000000e+00 : f32
    %148 = vector.broadcast %cst_29 : f32 to vector<2x192xf32>
    %149 = arith.addf %148, %147 : vector<2x192xf32>
    %150 = tpu.reciprocal %149 {approx = true} : vector<2x192xf32> -> vector<2x192xf32>
    %151 = vector.extract_strided_slice %143 {offsets = [0, 192], sizes = [2, 64], strides = [1, 1]} : vector<2x256xf32> to vector<2x64xf32>
    %152 = math.tanh %151 : vector<2x64xf32>
    %153 = vector.extract_strided_slice %150 {offsets = [0, 64], sizes = [2, 64], strides = [1, 1]} : vector<2x192xf32> to vector<2x64xf32>
    %154 = arith.mulf %153, %135 : vector<2x64xf32>
    %155 = vector.extract_strided_slice %150 {offsets = [0, 0], sizes = [2, 64], strides = [1, 1]} : vector<2x192xf32> to vector<2x64xf32>
    %156 = arith.mulf %155, %152 : vector<2x64xf32>
    %157 = arith.addf %154, %156 : vector<2x64xf32>
    %158 = vector.extract_strided_slice %150 {offsets = [0, 128], sizes = [2, 64], strides = [1, 1]} : vector<2x192xf32> to vector<2x64xf32>
    %159 = math.tanh %157 : vector<2x64xf32>
    %160 = arith.mulf %158, %159 : vector<2x64xf32>
    %161 = vector.extract_strided_slice %2 {offsets = [14, 0], sizes = [2, 256], strides = [1, 1]} : vector<16x512xf32> to vector<2x256xf32>
    %cst_30 = arith.constant dense<0.000000e+00> : vector<2x256xf32>
    %162 = tpu.matmul %160, %3, %cst_30 {dimension_numbers = #tpu.dot_dimension_numbers<[1], [0], [0], [1], [0, 0, 1, 1], [], []>} : vector<2x64xf32>, vector<64x256xf32>, vector<2x256xf32> -> vector<2x256xf32>
    %163 = arith.addf %161, %162 : vector<2x256xf32>
    %164 = vector.broadcast %4 : vector<1x256xf32> to vector<2x256xf32>
    %165 = arith.addf %163, %164 : vector<2x256xf32>
    %166 = vector.extract_strided_slice %165 {offsets = [0, 0], sizes = [2, 192], strides = [1, 1]} : vector<2x256xf32> to vector<2x192xf32>
    %cst_31 = arith.constant 0.000000e+00 : f32
    %167 = vector.broadcast %cst_31 : f32 to vector<2x192xf32>
    %168 = arith.subf %167, %166 : vector<2x192xf32>
    %169 = math.exp %168 : vector<2x192xf32>
    %cst_32 = arith.constant 1.000000e+00 : f32
    %170 = vector.broadcast %cst_32 : f32 to vector<2x192xf32>
    %171 = arith.addf %170, %169 : vector<2x192xf32>
    %172 = tpu.reciprocal %171 {approx = true} : vector<2x192xf32> -> vector<2x192xf32>
    %173 = vector.extract_strided_slice %165 {offsets = [0, 192], sizes = [2, 64], strides = [1, 1]} : vector<2x256xf32> to vector<2x64xf32>
    %174 = math.tanh %173 : vector<2x64xf32>
    %175 = vector.extract_strided_slice %172 {offsets = [0, 64], sizes = [2, 64], strides = [1, 1]} : vector<2x192xf32> to vector<2x64xf32>
    %176 = arith.mulf %175, %157 : vector<2x64xf32>
    %177 = vector.extract_strided_slice %172 {offsets = [0, 0], sizes = [2, 64], strides = [1, 1]} : vector<2x192xf32> to vector<2x64xf32>
    %178 = arith.mulf %177, %174 : vector<2x64xf32>
    %179 = arith.addf %176, %178 : vector<2x64xf32>
    %180 = vector.extract_strided_slice %172 {offsets = [0, 128], sizes = [2, 64], strides = [1, 1]} : vector<2x192xf32> to vector<2x64xf32>
    %181 = math.tanh %179 : vector<2x64xf32>
    %182 = arith.mulf %180, %181 : vector<2x64xf32>
    %183 = vector.extract_strided_slice %2 {offsets = [14, 256], sizes = [2, 256], strides = [1, 1]} : vector<16x512xf32> to vector<2x256xf32>
    %c0_33 = arith.constant 0 : index
    %c0_34 = arith.constant 0 : index
    %184 = vector.load %arg4[%c0_33, %c0_34] : memref<1x256xf32, #tpu.memory_space<vmem>>, vector<1x256xf32>
    %185 = vector.broadcast %184 : vector<1x256xf32> to vector<2x256xf32>
    %186 = arith.addf %183, %185 : vector<2x256xf32>
    %187 = vector.extract_strided_slice %186 {offsets = [0, 0], sizes = [2, 192], strides = [1, 1]} : vector<2x256xf32> to vector<2x192xf32>
    %cst_35 = arith.constant 0.000000e+00 : f32
    %188 = vector.broadcast %cst_35 : f32 to vector<2x192xf32>
    %189 = arith.subf %188, %187 : vector<2x192xf32>
    %190 = math.exp %189 : vector<2x192xf32>
    %cst_36 = arith.constant 1.000000e+00 : f32
    %191 = vector.broadcast %cst_36 : f32 to vector<2x192xf32>
    %192 = arith.addf %191, %190 : vector<2x192xf32>
    %193 = tpu.reciprocal %192 {approx = true} : vector<2x192xf32> -> vector<2x192xf32>
    %194 = vector.extract_strided_slice %186 {offsets = [0, 192], sizes = [2, 64], strides = [1, 1]} : vector<2x256xf32> to vector<2x64xf32>
    %195 = math.tanh %194 : vector<2x64xf32>
    %196 = vector.extract_strided_slice %193 {offsets = [0, 0], sizes = [2, 64], strides = [1, 1]} : vector<2x192xf32> to vector<2x64xf32>
    %197 = arith.mulf %196, %195 : vector<2x64xf32>
    %198 = vector.extract_strided_slice %193 {offsets = [0, 128], sizes = [2, 64], strides = [1, 1]} : vector<2x192xf32> to vector<2x64xf32>
    %199 = math.tanh %197 : vector<2x64xf32>
    %200 = arith.mulf %198, %199 : vector<2x64xf32>
    %c0_37 = arith.constant 0 : index
    %c0_38 = arith.constant 0 : index
    %201 = vector.load %arg5[%c0_37, %c0_38] : memref<1x64xf32, #tpu.memory_space<vmem>>, vector<1x64xf32>
    %202 = vector.broadcast %201 : vector<1x64xf32> to vector<2x64xf32>
    %203 = arith.mulf %182, %202 : vector<2x64xf32>
    %cst_39 = arith.constant dense<0.000000e+00> : vector<2xf32>
    %204 = vector.multi_reduction <add>, %203, %cst_39 [1] : vector<2x64xf32> to vector<2xf32>
    %205 = vector.shape_cast %204 : vector<2xf32> to vector<2x1xf32>
    %c0_40 = arith.constant 0 : index
    %c0_41 = arith.constant 0 : index
    %206 = vector.load %arg6[%c0_40, %c0_41] : memref<1x64xf32, #tpu.memory_space<vmem>>, vector<1x64xf32>
    %207 = vector.broadcast %206 : vector<1x64xf32> to vector<2x64xf32>
    %208 = arith.mulf %200, %207 : vector<2x64xf32>
    %cst_42 = arith.constant dense<0.000000e+00> : vector<2xf32>
    %209 = vector.multi_reduction <add>, %208, %cst_42 [1] : vector<2x64xf32> to vector<2xf32>
    %210 = vector.shape_cast %209 : vector<2xf32> to vector<2x1xf32>
    %211 = arith.addf %205, %210 : vector<2x1xf32>
    %c0_43 = arith.constant 0 : index
    %c0_44 = arith.constant 0 : index
    %212 = vector.load %arg7[%c0_43, %c0_44] : memref<1x1xf32, #tpu.memory_space<vmem>>, vector<1x1xf32>
    %213 = vector.broadcast %212 : vector<1x1xf32> to vector<2x1xf32>
    %214 = arith.addf %211, %213 : vector<2x1xf32>
    %c0_45 = arith.constant 0 : index
    %c0_46 = arith.constant 0 : index
    %215 = vector.load %arg8[%c0_45, %c0_46] : memref<2x1xf32, #tpu.memory_space<vmem>>, vector<2x1xf32>
    tpu.vector_store %arg8[%c0_45, %c0_46], %214 {strides = array<i32>} : memref<2x1xf32, #tpu.memory_space<vmem>>, vector<2x1xf32>,
    return
  }
}

</mosaic_0001>

<bundles_post_ra>
// kernel: tpu_custom_call.1
= control target key start
LH: loop header
LB: loop body
LE: loop exit
PB: predicated region body
PF: predicated region fallthrough
CT: control target
= control target key end

     0   :  { %s1900_s0 = inlined_call_operand.hbm [shape: f32[16,16], index: 0, kind: input, shape index: {}]   ;;  %s1901_s1 = inlined_call_operand.hbm [shape: f32[16,512], index: 1, kind: input, shape index: {}]   ;;  %s1902_s2 = inlined_call_operand.hbm [shape: f32[64,256], index: 2, kind: input, shape index: {}]   ;;  %s1903_s3 = inlined_call_operand.vmem [shape: f32[1,256], index: 3, kind: input, shape index: {}]   ;;  %s1904_s4 = inlined_call_operand.vmem [shape: f32[1,256], index: 4, kind: input, shape index: {}]   ;;  %s1905_s5 = inlined_call_operand.vmem [shape: f32[1,64], index: 5, kind: input, shape index: {}]   ;;  %s1906_s6 = inlined_call_operand.vmem [shape: f32[1,64], index: 6, kind: input, shape index: {}]   ;;  %s1907_s7 = inlined_call_operand.<no memory space> [shape: f32[1,1], index: 7, kind: input, shape index: {}]   ;;  %s1908_s8 = inlined_call_operand.vmem [shape: f32[2,1], index: 8, kind: output, shape index: {}]  }
   0x1   :  { %v13_v0 = vstv %s1907_s7 }
   0x2   :  { %14 = vst [vmem:[#allocation2] sm:$0x1] %v13_v0 }
   0x3   :  { %15 = vsyncpa [#allocation4], 0 }
   0x4   :  { %16 = vsyncpa [#allocation6], 0  ;;  %s1591_s29 = smov [#allocation5]   ;;  %s1521_s11 = scalar_lea.hbm %s1901_s1, 1024 }
   0x5   :  { %s34_s30 = sshll.u32 %s1591_s29, 4  ;;  %p1522_p0 = scmp.ne.s32.totalorder %s1901_s1, %s1521_s11  ;;  %s35_s30 = int_to_ptr.vmem [resolvable:$true] %s34_s30 }
   0x6   :  { %p1525_p1 = scmp.lt.u32.totalorder %s1521_s11, %s1901_s1 }
   0x8   :  { %p1527_p2 = pnand %p1525_p1, %p1522_p0 }
   0xa   :  { %1530 = shalt.err (!%p1527_p2)
}
   0xb   :  { %s1531_s7 = scalar_lea.vmem %s35_s30, 1024  ;;  %p1536_p4 = scmp.lt.s32.totalorder %s35_s30, %s35_s30 }
   0xc   :  { %p1532_p3 = scmp.ne.s32.totalorder %s35_s30, %s1531_s7  ;;  %p1537_p5 = scmp.lt.s32.totalorder %s1531_s7, %s1531_s7 }
   0xe   :  { %p1538_p6 = por %p1537_p5, %p1536_p4 }
  0x10   :  { %p1539_p7 = pnand %p1538_p6, %p1532_p3 }
  0x12   :  { %1542 = shalt.err (!%p1539_p7)
}
  0x13   :  { %s1592_s16 = smov 512   ;;  %s1593_s17 = smov 32  }
  0x14   :  { %40 = dma.hbm_to_vmem [thread:$0]  %s1901_s1, 1024, %s35_s30, [#allocation6], %s1592_s16, %s1592_s16, %s1593_s17  }
  0x15   :  { %s1594_s20 = smov [#allocation3]   ;;  %s1543_s24 = scalar_lea.hbm %s1900_s0, 256 }
  0x16   :  { %s22_s21 = sshll.u32 %s1594_s20, 4  ;;  %p1544_p8 = scmp.ne.s32.totalorder %s1900_s0, %s1543_s24  ;;  %s23_s21 = int_to_ptr.vmem [resolvable:$true] %s22_s21 }
  0x17   :  { %p1547_p9 = scmp.lt.u32.totalorder %s1543_s24, %s1900_s0 }
  0x19   :  { %p1549_p10 = pnand %p1547_p9, %p1544_p8 }
  0x1b   :  { %1552 = shalt.err (!%p1549_p10)
}
  0x1c   :  { %s1553_s29 = scalar_lea.vmem %s23_s21, 256  ;;  %p1558_p12 = scmp.lt.s32.totalorder %s23_s21, %s23_s21 }
  0x1d   :  { %p1554_p11 = scmp.ne.s32.totalorder %s23_s21, %s1553_s29  ;;  %p1559_p13 = scmp.lt.s32.totalorder %s1553_s29, %s1553_s29 }
  0x1f   :  { %p1560_p0 = por %p1559_p13, %p1558_p12 }
  0x21   :  { %p1561_p1 = pnand %p1560_p0, %p1554_p11 }
  0x23   :  { %1564 = shalt.err (!%p1561_p1)
}
  0x24   :  { %s1595_s1 = smov 128   ;;  %s1596_s30 = smov 8  }
  0x25   :  { %28 = dma.hbm_to_vmem [thread:$0]  %s1900_s0, 256, %s23_s21, [#allocation4], %s1595_s1, %s1595_s1, %s1596_s30  }
  0x26   :  { %s1597_s11 = smov [#allocation7]   ;;  %s1565_s15 = scalar_lea.hbm %s1902_s2, 2048 }
  0x27   :  { %s46_s12 = sshll.u32 %s1597_s11, 4  ;;  %p1566_p2 = scmp.ne.s32.totalorder %s1902_s2, %s1565_s15  ;;  %s47_s12 = int_to_ptr.vmem [resolvable:$true] %s46_s12 }
  0x28   :  { %p1569_p3 = scmp.lt.u32.totalorder %s1565_s15, %s1902_s2 }
  0x2a   :  { %p1571_p4 = pnand %p1569_p3, %p1566_p2 }
  0x2c   :  { %1574 = shalt.err (!%p1571_p4)
}
  0x2d   :  { %s1575_s19 = scalar_lea.vmem %s47_s12, 2048  ;;  %p1580_p6 = scmp.lt.s32.totalorder %s47_s12, %s47_s12 }
  0x2e   :  { %p1576_p5 = scmp.ne.s32.totalorder %s47_s12, %s1575_s19  ;;  %p1581_p7 = scmp.lt.s32.totalorder %s1575_s19, %s1575_s19 }
  0x30   :  { %p1582_p8 = por %p1581_p7, %p1580_p6 }
  0x32   :  { %p1583_p9 = pnand %p1582_p8, %p1576_p5 }
  0x34   :  { %1586 = shalt.err (!%p1583_p9)
}
  0x35   :  { %s1598_s0 = smov 256   ;;  %s1599_s20 = smov 16  }
  0x36   :  { %52 = dma.hbm_to_vmem [thread:$0]  %s1902_s2, 2048, %s47_s12, [#allocation6], %s1598_s0, %s1598_s0, %s1599_s20  }
  0x37   :  { %1587 = dma.done.wait [#allocation4], 256  }
  0x38   :  { %1588 = vsyncadd [#allocation4], 4294967040 }
  0x39   :  { %1589 = dma.done.wait [#allocation6], 3072  }
  0x3a   :  { %1590 = vsyncadd [#allocation6], 4294964224  ;;  %v1600_v1 = vmov 0.0   ;;  %v75_v2 = vld [vmem:[#allocation5 + $0x8] sm:$0xff]  ;;  %v74_v4 = vld [vmem:[#allocation5] sm:$0xff]  ;;  %vm82_vm0 = vcmask 130048   ;;  %v336_v37 = vlaneseq }
  0x3b   :  { %153 = vmatprep.mubr.f32.mxu0 %v1600_v1  ;;  %230 = vmatprep.mubr.f32.mxu1 %v1600_v1  ;;  %v79_v3 = vld [vmem:[#allocation5 + $0x28] sm:$0xff]  ;;  %v78_v6 = vld [vmem:[#allocation5 + $0x20] sm:$0xff]  ;;  %v244_v9 = vld [vmem:[#allocation7 + $0x18] sm:$0xff]  ;;  %s1601_s24 = smov 64   ;;  %vm258_vm1 = vcmask 523264   ;;  %vm1220_vm2 = vcmask 523270  }
  0x3c   :  { %v1266_v5 = vpack.c.bf16 %v79_v3, %v75_v2  ;;  %v242_v7 = vld [vmem:[#allocation7 + $0x8] sm:$0xff]  ;;  %v1268_v8 = vpack.c.bf16 %v78_v6, %v74_v4  ;;  %v241_v10 = vld [vmem:[#allocation7] sm:$0xff]  ;;  %v243_v11 = vld [vmem:[#allocation7 + $0x10] sm:$0xff]  ;;  %v1741_v39 = vshrl.u32 %v336_v37, 7  ;;  %vm1244_vm3 = vcmask 7174  }
  0x3d   :  { %v1688_v12 = vpack.c.bf16 %v244_v9, %v242_v7  ;;  %v246_v13 = vld [vmem:[#allocation7 + $0x28] sm:$0xff]  ;;  %v248_v14 = vld [vmem:[#allocation7 + $0x38] sm:$0xff]  ;;  %v1690_v15 = vld [vmem:[#allocation3] sm:$0xff]  ;;  %v1692_v16 = vpack.c.bf16 %v243_v11, %v241_v10 }
  0x3e   :  { %1267 = vmatprep.subr.bf16.mxu0 %v1266_v5  ;;  %v1695_v17 = vpack.c.bf16 %v248_v14, %v246_v13  ;;  %v245_v18 = vld [vmem:[#allocation7 + $0x20] sm:$0xff]  ;;  %v247_v19 = vld [vmem:[#allocation7 + $0x30] sm:$0xff]  ;;  %v250_v20 = vld [vmem:[#allocation7 + $0x48] sm:$0xff]  ;;  %v342_v40 = vsub.s32 1, %v1741_v39  ;;  %v338_v49 = vsub.s32 0, %v1741_v39 }
  0x3f   :  { %1269 = vmatpush1.bf16.msra.mxu0 %v1268_v8  ;;  %v252_v21 = vld [vmem:[#allocation7 + $0x58] sm:$0xff]  ;;  %v1700_v22 = vpack.c.bf16 %v247_v19, %v245_v18  ;;  %v249_v25 = vld [vmem:[#allocation7 + $0x40] sm:$0xff]  ;;  %v251_v26 = vld [vmem:[#allocation7 + $0x50] sm:$0xff] }
  0x40   :  { %1275 = vmatprep.subr.bf16.mxu0 %v1688_v12  ;;  %v1703_v23 = vld [vmem:[#allocation3 + $0x8] sm:$0xff]  ;;  %v1706_v24 = vpack.c.bf16 %v252_v21, %v250_v20  ;;  %v254_v27 = vld [vmem:[#allocation7 + $0x68] sm:$0xff]  ;;  %v1711_v29 = vpack.c.bf16 %v251_v26, %v249_v25  ;;  %v253_v31 = vld [vmem:[#allocation7 + $0x60] sm:$0xff] }
  0x41   :  { %v256_v28 = vld [vmem:[#allocation7 + $0x78] sm:$0xff]  ;;  %v255_v32 = vld [vmem:[#allocation7 + $0x70] sm:$0xff] }
  0x42   :  { %1252 = vmatmul.mubr.msk.f32.vlgmr.msra.gmra.mrb[0].mxu0 %vm82_vm0, %v1690_v15  ;;  %v1715_v30 = vpack.c.bf16 %v256_v28, %v254_v27  ;;  %v1718_v33 = vpack.c.bf16 %v255_v32, %v253_v31  ;;  %v257_v41 = vld [vmem:[%s1903_s3] sm:$0x3]  ;;  %v77_v59 = vld [vmem:[#allocation5 + $0x18] sm:$0xff] }
  0x43   :  { %1277 = vmatpush1.bf16.msra.mxu0 %v1692_v16  ;;  %159 = vmatprep.mubr.f32.mxu0 %v1600_v1  ;;  %v1749_v43 = vrot.slane %v257_v41, %v342_v40  ;;  %v1756_v50 = vrot.slane %v257_v41, %v338_v49  ;;  %v81_v60 = vld [vmem:[#allocation5 + $0x38] sm:$0xff]  ;;  %v76_v61 = vld [vmem:[#allocation5 + $0x10] sm:$0xff] }
  0x44   :  { %1279 = vmatprep.subr.bf16.mxu0 %v1695_v17  ;;  %v1270_v62 = vpack.c.bf16 %v81_v60, %v77_v59  ;;  %v80_v63 = vld [vmem:[#allocation5 + $0x30] sm:$0xff] }
  0x45   :  { %v1272_v0 = vpack.c.bf16 %v80_v63, %v76_v61  ;;  %v1779_v8 = vld [vmem:[%s1904_s4] sm:$0x3] }
  0x46   :  { %1253 = vmatmul.mubr.msk.f32.gmra.mrb[2].mxu0 %vm82_vm0, %v1703_v23  ;;  %1271 = vmatprep.subr.bf16.mxu1 %v1270_v62  ;;  %v1185_v11 = vrot.slane %v1779_v8, %v338_v49 }
  0x47   :  { %1281 = vmatpush1.bf16.msra.mxu0 %v1700_v22  ;;  %326 = vmatprep.mubr.f32.mxu0 %v1600_v1 }
  0x48   :  { %1283 = vmatprep.subr.bf16.mxu0 %v1706_v24  ;;  %1273 = vmatpush1.bf16.msra.mxu1 %v1272_v0 }
  0x49   :  { %1291 = vmatprep.subr.bf16.mxu1 %v1688_v12 }
  0x4b   :  { %1285 = vmatpush1.bf16.msra.mxu0 %v1711_v29  ;;  %1254 = vmatmul.mubr.msk.f32.vlgmr.msra.gmra.mrb[0].mxu1 %vm82_vm0, %v1690_v15 }
  0x4c   :  { %1287 = vmatprep.subr.bf16.mxu0 %v1715_v30  ;;  %1293 = vmatpush1.bf16.msra.mxu1 %v1692_v16 }
  0x4d   :  { %234 = vmatprep.mubr.f32.mxu1 %v1600_v1  ;;  %1295 = vmatprep.subr.bf16.mxu1 %v1695_v17 }
  0x4f   :  { %1289 = vmatpush1.bf16.msra.mxu0 %v1718_v33  ;;  %1255 = vmatmul.mubr.msk.f32.gmra.mrb[2].mxu1 %vm82_vm0, %v1703_v23 }
  0x50   :  { %1307 = vmatprep.subr.bf16.mxu0 %v1688_v12  ;;  %1297 = vmatpush1.bf16.msra.mxu1 %v1700_v22 }
  0x51   :  { %443 = vmatprep.mubr.f32.mxu1 %v1600_v1  ;;  %1299 = vmatprep.subr.bf16.mxu1 %v1706_v24 }
  0x52   :  { %327 = vmatmul.mubr.f32.vlgmr.msra.gmra.mrb[4].mxu0 %v1600_v1 }
  0x53   :  { %1309 = vmatpush1.bf16.msra.mxu0 %v1692_v16  ;;  %559 = vmatprep.mubr.f32.mxu0 %v1600_v1 }
  0x54   :  { %1311 = vmatprep.subr.bf16.mxu0 %v1695_v17  ;;  %1301 = vmatpush1.bf16.msra.mxu1 %v1711_v29 }
  0x55   :  { %1303 = vmatprep.subr.bf16.mxu1 %v1715_v30 }
  0x57   :  { %1313 = vmatpush1.bf16.msra.mxu0 %v1700_v22 }
  0x58   :  { %1315 = vmatprep.subr.bf16.mxu0 %v1706_v24  ;;  %1305 = vmatpush1.bf16.msra.mxu1 %v1718_v33 }
  0x59   :  { %1323 = vmatprep.subr.bf16.mxu1 %v1688_v12 }
  0x5b   :  { %1317 = vmatpush1.bf16.msra.mxu0 %v1711_v29 }
  0x5c   :  { %1319 = vmatprep.subr.bf16.mxu0 %v1715_v30 }
  0x5f   :  { %1321 = vmatpush1.bf16.msra.mxu0 %v1718_v33 }
  0x60   :  { %1339 = vmatprep.subr.bf16.mxu0 %v1688_v12 }
 0x115   :  { %v1733_v34 = vpop.f32.mrb[0].mxu0 }
 0x116   :  { %v1735_v35 = vpop.f32.mrb[1].mxu0 }
 0x119   :  { %v1737_v36 = vpop.f32.mrb[2].mxu0 }
 0x11a   :  { %v1739_v38 = vpop.f32.mrb[3].mxu0 }
 0x11e   :  { %v232_v9 = vpop.f32.mrb[0].mxu1 }
 0x11f   :  { %v233_v10 = vpop.f32.mrb[1].mxu1 }
 0x122   :  { %v236_v13 = vpop.f32.mrb[2].mxu1 }
 0x123   :  { %v1782_v14 = vadd.f32 %v1185_v11, %v236_v13  ;;  %v1784_v15 = vpop.f32.mrb[3].mxu1 }
 0x125   :  { %v328_v42 = vpop.f32.mrb[4].mxu0  ;;  %v1194_v39 = vsub.f32 0.0, %v1782_v14 }
 0x126   :  { %v333_v44 = vadd.f32 %v328_v42, %v1733_v34  ;;  %v330_v45 = vpop.f32.mrb[5].mxu0 }
 0x127   :  { %v334_v46 = vadd.f32 %v330_v45, %v1735_v35 }
 0x128   :  { %v346_v51 = vadd.f32 %v1756_v50, %v333_v44 }
 0x129   :  { %v347_v47 = vadd.f32 %v1749_v43, %v334_v46 }
 0x12a   :  { %v348_v52 = vsub.f32 0.0, %v346_v51 }
 0x12b   :  { %1413 = vtanh.f32 %v347_v47  ;;  %v349_v6 = vsub.f32 0.0, %v347_v47 }
 0x12c   :  { %v350_v53 = vmul.f32 1.442695, %v348_v52 }
 0x12d   :  { %v352_v7 = vmul.f32 1.442695, %v349_v6 }
 0x12e   :  { %1415 = vpow2.f32 %v350_v53 }
 0x135   :  { %v1414_v48 = vpop.eup %1413 }
 0x136   :  { %361 = vrot.lane.b32.xlu0 %v1414_v48, %s1601_s24 }
 0x138   :  { %v1416_v54 = vpop.eup %1415 }
 0x139   :  { %v354_v55 = vadd.f32 1.0, %v1416_v54 }
 0x13b   :  { %1417 = vrcp.f32 %v354_v55 }
 0x145   :  { %v1418_v56 = vpop.eup %1417 }
 0x146   :  { %v359_v2 = vmul.f32 0.0, %v1418_v56 }
 0x1a8   :  { %v362_v57 = vpop.permute.xlu0 %361 }
 0x1a9   :  { %v364_v58 = vmul.f32 %v1418_v56, %v362_v57 }
 0x1ab   :  { %366 = vrot.lane.b32.xlu0 %v364_v58, %s1601_s24 }
 0x21d   :  { %v367_v3 = vpop.permute.xlu0 %366 }
 0x21e   :  { %v369_v4 = vadd.f32 %v367_v3, %v359_v2 }
 0x220   :  { %1419 = vtanh.f32 %v369_v4  ;;  %v472_v52 = vrot.slane %v369_v4, 6 }
 0x221   :  { %1421 = vpow2.f32 %v352_v7 }
 0x22a   :  { %v1420_v5 = vpop.eup %1419 }
 0x22b   :  { %372 = vrot.lane.b32.xlu1 %v1420_v5, %s1601_s24  ;;  %v1422_v18 = vpop.eup %1421 }
 0x22c   :  { %v355_v19 = vadd.f32 1.0, %v1422_v18 }
 0x22e   :  { %1423 = vrcp.f32 %v355_v19 }
 0x238   :  { %v1424_v20 = vpop.eup %1423 }
 0x29d   :  { %v373_v21 = vpop.permute.xlu1 %372 }
 0x29e   :  { %v375_v23 = vmul.f32 %v1424_v20, %v373_v21 }
 0x2a0   :  { %1256 = vmatmul.mubr.msk.f32.vlgmr.msra.gmra.mrb[4].mxu1 %vm258_vm1, %v375_v23 }
 0x2a1   :  { %1325 = vmatpush1.bf16.msra.mxu1 %v1692_v16  ;;  %675 = vmatprep.mubr.f32.mxu1 %v1600_v1 }
 0x2a2   :  { %1327 = vmatprep.subr.bf16.mxu1 %v1695_v17 }
 0x2a5   :  { %1329 = vmatpush1.bf16.msra.mxu1 %v1700_v22 }
 0x2a6   :  { %1331 = vmatprep.subr.bf16.mxu1 %v1706_v24 }
 0x2a9   :  { %1333 = vmatpush1.bf16.msra.mxu1 %v1711_v29 }
 0x2aa   :  { %1335 = vmatprep.subr.bf16.mxu1 %v1715_v30 }
 0x2ad   :  { %1337 = vmatpush1.bf16.msra.mxu1 %v1718_v33 }
 0x2ae   :  { %1355 = vmatprep.subr.bf16.mxu1 %v1688_v12 }
 0x373   :  { %v445_v25 = vpop.f32.mrb[4].mxu1 }
 0x374   :  { %v452_v26 = vrot.slane %v445_v25, 6  ;;  %v447_v27 = vpop.f32.mrb[5].mxu1 }
 0x375   :  { %v453_v28 = vrot.slane %v447_v27, 6 }
 0x376   :  { %v456_v31 = vadd.f32 %v452_v26, %v1733_v34 }
 0x377   :  { %v457_v32 = vadd.f32 %v453_v28, %v1735_v35 }
 0x378   :  { %v458_v42 = vadd.f32 %v456_v31, %v1756_v50 }
 0x379   :  { %v459_v37 = vadd.f32 %v457_v32, %v1749_v43 }
 0x37a   :  { %v460_v44 = vsub.f32 0.0, %v458_v42 }
 0x37b   :  { %1425 = vtanh.f32 %v459_v37  ;;  %v461_v57 = vsub.f32 0.0, %v459_v37 }
 0x37c   :  { %v462_v45 = vmul.f32 1.442695, %v460_v44 }
 0x37d   :  { %v464_v58 = vmul.f32 1.442695, %v461_v57 }
 0x37e   :  { %1427 = vpow2.f32 %v462_v45 }
 0x385   :  { %v1426_v41 = vpop.eup %1425 }
 0x386   :  { %476 = vrot.lane.b32.xlu1 %v1426_v41, %s1601_s24 }
 0x388   :  { %v1428_v46 = vpop.eup %1427 }
 0x389   :  { %v466_v47 = vadd.f32 1.0, %v1428_v46 }
 0x38b   :  { %1429 = vrcp.f32 %v466_v47 }
 0x395   :  { %v1430_v48 = vpop.eup %1429 }
 0x396   :  { %v474_v53 = vmul.f32 %v1430_v48, %v472_v52 }
 0x3f8   :  { %v477_v49 = vpop.permute.xlu1 %476 }
 0x3f9   :  { %v479_v51 = vmul.f32 %v1430_v48, %v477_v49 }
 0x3fb   :  { %481 = vrot.lane.b32.xlu0 %v479_v51, %s1601_s24 }
 0x46d   :  { %v482_v54 = vpop.permute.xlu0 %481 }
 0x46e   :  { %v484_v55 = vadd.f32 %v482_v54, %v474_v53 }
 0x470   :  { %1431 = vtanh.f32 %v484_v55  ;;  %v588_v26 = vrot.slane %v484_v55, 6 }
 0x471   :  { %1433 = vpow2.f32 %v464_v58 }
 0x47a   :  { %v1432_v56 = vpop.eup %1431 }
 0x47b   :  { %487 = vrot.lane.b32.xlu1 %v1432_v56, %s1601_s24  ;;  %v1434_v59 = vpop.eup %1433 }
 0x47c   :  { %v467_v60 = vadd.f32 1.0, %v1434_v59 }
 0x47e   :  { %1435 = vrcp.f32 %v467_v60 }
 0x488   :  { %v1436_v61 = vpop.eup %1435 }
 0x4ed   :  { %v488_v62 = vpop.permute.xlu1 %487 }
 0x4ee   :  { %v490_v63 = vmul.f32 %v1436_v61, %v488_v62 }
 0x4f0   :  { %v492_v0 = vrot.slane %v490_v63, 2 }
 0x4f2   :  { %1257 = vmatmul.mubr.msk.f32.vlgmr.msra.gmra.mrb[6].mxu0 %vm258_vm1, %v492_v0 }
 0x4f3   :  { %1341 = vmatpush1.bf16.msra.mxu0 %v1692_v16  ;;  %791 = vmatprep.mubr.f32.mxu0 %v1600_v1 }
 0x4f4   :  { %1343 = vmatprep.subr.bf16.mxu0 %v1695_v17 }
 0x4f7   :  { %1345 = vmatpush1.bf16.msra.mxu0 %v1700_v22 }
 0x4f8   :  { %1347 = vmatprep.subr.bf16.mxu0 %v1706_v24 }
 0x4fb   :  { %1349 = vmatpush1.bf16.msra.mxu0 %v1711_v29 }
 0x4fc   :  { %1351 = vmatprep.subr.bf16.mxu0 %v1715_v30 }
 0x4ff   :  { %1353 = vmatpush1.bf16.msra.mxu0 %v1718_v33 }
 0x500   :  { %1371 = vmatprep.subr.bf16.mxu0 %v1688_v12 }
 0x5c5   :  { %v561_v2 = vpop.f32.mrb[6].mxu0 }
 0x5c6   :  { %v568_v3 = vrot.slane %v561_v2, 4  ;;  %v563_v4 = vpop.f32.mrb[7].mxu0 }
 0x5c7   :  { %v569_v5 = vrot.slane %v563_v4, 4 }
 0x5c8   :  { %v572_v6 = vadd.f32 %v568_v3, %v1733_v34 }
 0x5c9   :  { %v573_v7 = vadd.f32 %v569_v5, %v1735_v35 }
 0x5ca   :  { %v574_v11 = vadd.f32 %v572_v6, %v1756_v50 }
 0x5cb   :  { %v575_v9 = vadd.f32 %v573_v7, %v1749_v43 }
 0x5cc   :  { %v576_v13 = vsub.f32 0.0, %v574_v11 }
 0x5cd   :  { %1437 = vtanh.f32 %v575_v9  ;;  %v577_v37 = vsub.f32 0.0, %v575_v9 }
 0x5ce   :  { %v578_v18 = vmul.f32 1.442695, %v576_v13 }
 0x5cf   :  { %v580_v41 = vmul.f32 1.442695, %v577_v37 }
 0x5d0   :  { %1439 = vpow2.f32 %v578_v18 }
 0x5d7   :  { %v1438_v10 = vpop.eup %1437 }
 0x5d8   :  { %592 = vrot.lane.b32.xlu0 %v1438_v10, %s1601_s24 }
 0x5da   :  { %v1440_v19 = vpop.eup %1439 }
 0x5db   :  { %v582_v20 = vadd.f32 1.0, %v1440_v19 }
 0x5dd   :  { %1441 = vrcp.f32 %v582_v20 }
 0x5e7   :  { %v1442_v21 = vpop.eup %1441 }
 0x5e8   :  { %v590_v27 = vmul.f32 %v1442_v21, %v588_v26 }
 0x64a   :  { %v593_v23 = vpop.permute.xlu0 %592 }
 0x64b   :  { %v595_v25 = vmul.f32 %v1442_v21, %v593_v23 }
 0x64d   :  { %597 = vrot.lane.b32.xlu1 %v595_v25, %s1601_s24 }
 0x6bf   :  { %v598_v28 = vpop.permute.xlu1 %597 }
 0x6c0   :  { %v600_v31 = vadd.f32 %v598_v28, %v590_v27 }
 0x6c2   :  { %1443 = vtanh.f32 %v600_v31 }
 0x6c3   :  { %1445 = vpow2.f32 %v580_v41 }
 0x6cc   :  { %v1444_v32 = vpop.eup %1443 }
 0x6cd   :  { %603 = vrot.lane.b32.xlu0 %v1444_v32, %s1601_s24  ;;  %v1446_v42 = vpop.eup %1445 }
 0x6ce   :  { %v583_v44 = vadd.f32 1.0, %v1446_v42 }
 0x6d0   :  { %1447 = vrcp.f32 %v583_v44 }
 0x6da   :  { %v1448_v45 = vpop.eup %1447 }
 0x73f   :  { %v604_v46 = vpop.permute.xlu0 %603 }
 0x740   :  { %v606_v47 = vmul.f32 %v1448_v45, %v604_v46 }
 0x742   :  { %v608_v48 = vrot.slane %v606_v47, 4 }
 0x744   :  { %1258 = vmatmul.mubr.msk.f32.vlgmr.msra.gmra.mrb[6].mxu1 %vm258_vm1, %v608_v48 }
 0x745   :  { %1357 = vmatpush1.bf16.msra.mxu1 %v1692_v16  ;;  %900 = vmatprep.mubr.f32.mxu1 %v1600_v1 }
 0x746   :  { %1359 = vmatprep.subr.bf16.mxu1 %v1695_v17 }
 0x749   :  { %1361 = vmatpush1.bf16.msra.mxu1 %v1700_v22 }
 0x74a   :  { %1363 = vmatprep.subr.bf16.mxu1 %v1706_v24 }
 0x74d   :  { %1365 = vmatpush1.bf16.msra.mxu1 %v1711_v29 }
 0x74e   :  { %1367 = vmatprep.subr.bf16.mxu1 %v1715_v30 }
 0x751   :  { %1369 = vmatpush1.bf16.msra.mxu1 %v1718_v33 }
 0x752   :  { %1387 = vmatprep.subr.bf16.mxu1 %v1688_v12 }
 0x817   :  { %v677_v49 = vpop.f32.mrb[6].mxu1 }
 0x818   :  { %v684_v51 = vrot.slane %v677_v49, 2  ;;  %v679_v52 = vpop.f32.mrb[7].mxu1 }
 0x819   :  { %v685_v53 = vrot.slane %v679_v52, 2 }
 0x81a   :  { %v688_v54 = vadd.f32 %v684_v51, %v1733_v34  ;;  %v704_v34 = vrot.slane %v600_v31, 6 }
 0x81b   :  { %v689_v55 = vadd.f32 %v685_v53, %v1735_v35 }
 0x81c   :  { %v690_v58 = vadd.f32 %v688_v54, %v1756_v50 }
 0x81d   :  { %v691_v56 = vadd.f32 %v689_v55, %v1749_v43 }
 0x81e   :  { %v692_v59 = vsub.f32 0.0, %v690_v58 }
 0x81f   :  { %1449 = vtanh.f32 %v691_v56  ;;  %v693_v5 = vsub.f32 0.0, %v691_v56 }
 0x820   :  { %v694_v60 = vmul.f32 1.442695, %v692_v59 }
 0x821   :  { %v696_v6 = vmul.f32 1.442695, %v693_v5 }
 0x822   :  { %1451 = vpow2.f32 %v694_v60 }
 0x829   :  { %v1450_v57 = vpop.eup %1449 }
 0x82a   :  { %708 = vrot.lane.b32.xlu1 %v1450_v57, %s1601_s24 }
 0x82c   :  { %v1452_v12 = vpop.eup %1451 }
 0x82d   :  { %v698_v61 = vadd.f32 1.0, %v1452_v12 }
 0x82f   :  { %1453 = vrcp.f32 %v698_v61 }
 0x839   :  { %v1454_v62 = vpop.eup %1453 }
 0x83a   :  { %v706_v35 = vmul.f32 %v1454_v62, %v704_v34 }
 0x89c   :  { %v709_v63 = vpop.permute.xlu1 %708 }
 0x89d   :  { %v711_v0 = vmul.f32 %v1454_v62, %v709_v63 }
 0x89f   :  { %713 = vrot.lane.b32.xlu0 %v711_v0, %s1601_s24 }
 0x911   :  { %v714_v2 = vpop.permute.xlu0 %713 }
 0x912   :  { %v716_v3 = vadd.f32 %v714_v2, %v706_v35 }
 0x914   :  { %1455 = vtanh.f32 %v716_v3  ;;  %v814_v45 = vrot.slane %v716_v3, 6 }
 0x915   :  { %1457 = vpow2.f32 %v696_v6 }
 0x91e   :  { %v1456_v4 = vpop.eup %1455 }
 0x91f   :  { %719 = vrot.lane.b32.xlu1 %v1456_v4, %s1601_s24  ;;  %v1458_v7 = vpop.eup %1457 }
 0x920   :  { %v699_v9 = vadd.f32 1.0, %v1458_v7 }
 0x922   :  { %1459 = vrcp.f32 %v699_v9 }
 0x92c   :  { %v1460_v10 = vpop.eup %1459 }
 0x991   :  { %v720_v11 = vpop.permute.xlu1 %719 }
 0x992   :  { %v722_v13 = vmul.f32 %v1460_v10, %v720_v11 }
 0x994   :  { %v724_v18 = vrot.slane %v722_v13, 6 }
 0x996   :  { %1259 = vmatmul.mubr.msk.f32.vlgmr.msra.gmra.mrb[8].mxu0 %vm258_vm1, %v724_v18 }
 0x997   :  { %1373 = vmatpush1.bf16.msra.mxu0 %v1692_v16  ;;  %1016 = vmatprep.mubr.f32.mxu0 %v1600_v1 }
 0x998   :  { %1375 = vmatprep.subr.bf16.mxu0 %v1695_v17 }
 0x99b   :  { %1377 = vmatpush1.bf16.msra.mxu0 %v1700_v22 }
 0x99c   :  { %1379 = vmatprep.subr.bf16.mxu0 %v1706_v24 }
 0x99f   :  { %1381 = vmatpush1.bf16.msra.mxu0 %v1711_v29 }
 0x9a0   :  { %1383 = vmatprep.subr.bf16.mxu0 %v1715_v30 }
 0x9a3   :  { %1385 = vmatpush1.bf16.msra.mxu0 %v1718_v33 }
 0xa69   :  { %v793_v19 = vpop.f32.mrb[8].mxu0 }
 0xa6a   :  { %v798_v20 = vadd.f32 %v793_v19, %v1737_v36  ;;  %v795_v21 = vpop.f32.mrb[9].mxu0 }
 0xa6b   :  { %v799_v23 = vadd.f32 %v795_v21, %v1739_v38 }
 0xa6c   :  { %v800_v27 = vadd.f32 %v798_v20, %v1756_v50 }
 0xa6d   :  { %v801_v25 = vadd.f32 %v799_v23, %v1749_v43 }
 0xa6e   :  { %v802_v28 = vsub.f32 0.0, %v800_v27 }
 0xa6f   :  { %1461 = vtanh.f32 %v801_v25  ;;  %v803_v51 = vsub.f32 0.0, %v801_v25 }
 0xa70   :  { %v804_v31 = vmul.f32 1.442695, %v802_v28 }
 0xa71   :  { %v806_v52 = vmul.f32 1.442695, %v803_v51 }
 0xa72   :  { %1463 = vpow2.f32 %v804_v31 }
 0xa79   :  { %v1462_v26 = vpop.eup %1461 }
 0xa7a   :  { %818 = vrot.lane.b32.xlu0 %v1462_v26, %s1601_s24 }
 0xa7c   :  { %v1464_v32 = vpop.eup %1463 }
 0xa7d   :  { %v808_v37 = vadd.f32 1.0, %v1464_v32 }
 0xa7f   :  { %1465 = vrcp.f32 %v808_v37 }
 0xa89   :  { %v1466_v41 = vpop.eup %1465 }
 0xa8a   :  { %v816_v46 = vmul.f32 %v1466_v41, %v814_v45 }
 0xaec   :  { %v819_v42 = vpop.permute.xlu0 %818 }
 0xaed   :  { %v821_v44 = vmul.f32 %v1466_v41, %v819_v42 }
 0xaef   :  { %823 = vrot.lane.b32.xlu1 %v821_v44, %s1601_s24 }
 0xb61   :  { %v824_v47 = vpop.permute.xlu1 %823 }
 0xb62   :  { %v826_v48 = vadd.f32 %v824_v47, %v816_v46 }
 0xb64   :  { %1467 = vtanh.f32 %v826_v48  ;;  %v929_v34 = vrot.slane %v826_v48, 6 }
 0xb65   :  { %1469 = vpow2.f32 %v806_v52 }
 0xb6e   :  { %v1468_v49 = vpop.eup %1467 }
 0xb6f   :  { %829 = vrot.lane.b32.xlu0 %v1468_v49, %s1601_s24  ;;  %v1470_v53 = vpop.eup %1469 }
 0xb70   :  { %v809_v54 = vadd.f32 1.0, %v1470_v53 }
 0xb72   :  { %1471 = vrcp.f32 %v809_v54 }
 0xb7c   :  { %v1472_v55 = vpop.eup %1471 }
 0xbe1   :  { %v830_v56 = vpop.permute.xlu0 %829 }
 0xbe2   :  { %v832_v57 = vmul.f32 %v1472_v55, %v830_v56 }
 0xbe4   :  { %1260 = vmatmul.mubr.msk.f32.vlgmr.msra.gmra.mrb[8].mxu1 %vm258_vm1, %v832_v57 }
 0xbe5   :  { %1389 = vmatpush1.bf16.msra.mxu1 %v1692_v16  ;;  %1132 = vmatprep.mubr.f32.mxu1 %v1600_v1 }
 0xbe6   :  { %1391 = vmatprep.subr.bf16.mxu1 %v1695_v17 }
 0xbe9   :  { %1393 = vmatpush1.bf16.msra.mxu1 %v1700_v22 }
 0xbea   :  { %1395 = vmatprep.subr.bf16.mxu1 %v1706_v24 }
 0xbed   :  { %1397 = vmatpush1.bf16.msra.mxu1 %v1711_v29 }
 0xbee   :  { %1399 = vmatprep.subr.bf16.mxu1 %v1715_v30 }
 0xbf1   :  { %1401 = vmatpush1.bf16.msra.mxu1 %v1718_v33 }
 0xcb7   :  { %v902_v58 = vpop.f32.mrb[8].mxu1 }
 0xcb8   :  { %v909_v59 = vrot.slane %v902_v58, 6  ;;  %v904_v60 = vpop.f32.mrb[9].mxu1 }
 0xcb9   :  { %v910_v12 = vrot.slane %v904_v60, 6 }
 0xcba   :  { %v913_v16 = vadd.f32 %v909_v59, %v1737_v36 }
 0xcbb   :  { %v914_v1 = vadd.f32 %v910_v12, %v1739_v38 }
 0xcbc   :  { %v915_v24 = vadd.f32 %v913_v16, %v1756_v50 }
 0xcbd   :  { %v916_v17 = vadd.f32 %v914_v1, %v1749_v43 }
 0xcbe   :  { %v917_v29 = vsub.f32 0.0, %v915_v24  ;;  %v1189_v24 = vrot.slane %v1779_v8, %v342_v40  ;;  %v1196_v8 = vmul.f32 1.442695, %v1194_v39 }
 0xcbf   :  { %1473 = vtanh.f32 %v916_v17  ;;  %v918_v5 = vsub.f32 0.0, %v916_v17 }
 0xcc0   :  { %v919_v30 = vmul.f32 1.442695, %v917_v29 }
 0xcc1   :  { %v921_v6 = vmul.f32 1.442695, %v918_v5 }
 0xcc2   :  { %1475 = vpow2.f32 %v919_v30 }
 0xcc9   :  { %v1474_v22 = vpop.eup %1473 }
 0xcca   :  { %933 = vrot.lane.b32.xlu1 %v1474_v22, %s1601_s24 }
 0xccc   :  { %v1476_v33 = vpop.eup %1475 }
 0xccd   :  { %v923_v61 = vadd.f32 1.0, %v1476_v33  ;;  %v1193_v33 = vadd.f32 %v1189_v24, %v1784_v15 }
 0xccf   :  { %1477 = vrcp.f32 %v923_v61 }
 0xcd9   :  { %v1478_v62 = vpop.eup %1477 }
 0xcda   :  { %v931_v35 = vmul.f32 %v1478_v62, %v929_v34 }
 0xd3c   :  { %v934_v63 = vpop.permute.xlu1 %933 }
 0xd3d   :  { %v936_v0 = vmul.f32 %v1478_v62, %v934_v63 }
 0xd3f   :  { %938 = vrot.lane.b32.xlu0 %v936_v0, %s1601_s24 }
 0xdb1   :  { %v939_v2 = vpop.permute.xlu0 %938 }
 0xdb2   :  { %v941_v3 = vadd.f32 %v939_v2, %v931_v35 }
 0xdb4   :  { %1479 = vtanh.f32 %v941_v3  ;;  %v1045_v47 = vrot.slane %v941_v3, 6 }
 0xdb5   :  { %1481 = vpow2.f32 %v921_v6 }
 0xdbe   :  { %v1480_v4 = vpop.eup %1479 }
 0xdbf   :  { %944 = vrot.lane.b32.xlu1 %v1480_v4, %s1601_s24  ;;  %v1482_v7 = vpop.eup %1481 }
 0xdc0   :  { %v924_v9 = vadd.f32 1.0, %v1482_v7 }
 0xdc2   :  { %1483 = vrcp.f32 %v924_v9 }
 0xdcc   :  { %v1484_v10 = vpop.eup %1483 }
 0xe31   :  { %v945_v11 = vpop.permute.xlu1 %944 }
 0xe32   :  { %v947_v13 = vmul.f32 %v1484_v10, %v945_v11 }
 0xe34   :  { %v949_v18 = vrot.slane %v947_v13, 2 }
 0xe36   :  { %1261 = vmatmul.mubr.msk.f32.vlgmr.msra.gmra.mrb[10].mxu0 %vm258_vm1, %v949_v18 }
 0xf09   :  { %v1018_v19 = vpop.f32.mrb[10].mxu0 }
 0xf0a   :  { %v1025_v20 = vrot.slane %v1018_v19, 4  ;;  %v1020_v21 = vpop.f32.mrb[11].mxu0 }
 0xf0b   :  { %v1026_v23 = vrot.slane %v1020_v21, 4 }
 0xf0c   :  { %v1029_v25 = vadd.f32 %v1025_v20, %v1737_v36 }
 0xf0d   :  { %v1030_v26 = vadd.f32 %v1026_v23, %v1739_v38  ;;  %v1264_v23 = vld [vmem:[%s1906_s6] ss:$0 sm:$0xff] }
 0xf0e   :  { %v1031_v31 = vadd.f32 %v1029_v25, %v1756_v50 }
 0xf0f   :  { %v1032_v27 = vadd.f32 %v1030_v26, %v1749_v43 }
 0xf10   :  { %v1033_v32 = vsub.f32 0.0, %v1031_v31 }
 0xf11   :  { %1485 = vtanh.f32 %v1032_v27  ;;  %v1034_v53 = vsub.f32 0.0, %v1032_v27 }
 0xf12   :  { %v1035_v37 = vmul.f32 1.442695, %v1033_v32 }
 0xf13   :  { %v1037_v54 = vmul.f32 1.442695, %v1034_v53 }
 0xf14   :  { %1487 = vpow2.f32 %v1035_v37 }
 0xf1b   :  { %v1486_v28 = vpop.eup %1485 }
 0xf1c   :  { %1049 = vrot.lane.b32.xlu0 %v1486_v28, %s1601_s24 }
 0xf1e   :  { %v1488_v41 = vpop.eup %1487 }
 0xf1f   :  { %v1039_v42 = vadd.f32 1.0, %v1488_v41 }
 0xf21   :  { %1489 = vrcp.f32 %v1039_v42  ;;  %v1263_v42 = vld [vmem:[%s1905_s5] ss:$0 sm:$0xff] }
 0xf2b   :  { %v1490_v44 = vpop.eup %1489 }
 0xf2c   :  { %v1047_v48 = vmul.f32 %v1490_v44, %v1045_v47 }
 0xf8e   :  { %v1050_v45 = vpop.permute.xlu0 %1049 }
 0xf8f   :  { %v1052_v46 = vmul.f32 %v1490_v44, %v1050_v45 }
 0xf91   :  { %1054 = vrot.lane.b32.xlu1 %v1052_v46, %s1601_s24 }
0x1003   :  { %v1055_v49 = vpop.permute.xlu1 %1054 }
0x1004   :  { %v1057_v51 = vadd.f32 %v1055_v49, %v1047_v48  ;;  %v1265_v48 = vld [vmem:[#allocation2] ss:$0 sm:$0xff] }
0x1006   :  { %1491 = vtanh.f32 %v1057_v51  ;;  %v1161_v13 = vrot.slane %v1057_v51, 6 }
0x1007   :  { %1493 = vpow2.f32 %v1037_v54 }
0x1010   :  { %v1492_v52 = vpop.eup %1491 }
0x1011   :  { %1060 = vrot.lane.b32.xlu0 %v1492_v52, %s1601_s24  ;;  %v1494_v55 = vpop.eup %1493 }
0x1012   :  { %v1040_v56 = vadd.f32 1.0, %v1494_v55 }
0x1014   :  { %1495 = vrcp.f32 %v1040_v56 }
0x101e   :  { %v1496_v57 = vpop.eup %1495 }
0x1083   :  { %v1061_v58 = vpop.permute.xlu0 %1060 }
0x1084   :  { %v1063_v59 = vmul.f32 %v1496_v57, %v1061_v58 }
0x1086   :  { %v1065_v60 = vrot.slane %v1063_v59, 4 }
0x1088   :  { %1262 = vmatmul.mubr.msk.f32.vlgmr.msra.gmra.mrb[10].mxu1 %vm258_vm1, %v1065_v60 }
0x115b   :  { %v1134_v12 = vpop.f32.mrb[10].mxu1 }
0x115c   :  { %v1141_v16 = vrot.slane %v1134_v12, 2  ;;  %v1136_v1 = vpop.f32.mrb[11].mxu1 }
0x115d   :  { %v1142_v17 = vrot.slane %v1136_v1, 2 }
0x115e   :  { %v1145_v22 = vadd.f32 %v1141_v16, %v1737_v36 }
0x115f   :  { %v1146_v29 = vadd.f32 %v1142_v17, %v1739_v38  ;;  %v1195_v38 = vsub.f32 0.0, %v1193_v33 }
0x1160   :  { %v1147_v36 = vadd.f32 %v1145_v22, %v1756_v50 }
0x1161   :  { %v1148_v30 = vadd.f32 %v1146_v29, %v1749_v43  ;;  %v1198_v15 = vmul.f32 1.442695, %v1195_v38 }
0x1162   :  { %v1149_v63 = vsub.f32 0.0, %v1147_v36 }
0x1163   :  { %1497 = vtanh.f32 %v1148_v30  ;;  %v1150_v27 = vsub.f32 0.0, %v1148_v30 }
0x1164   :  { %1499 = vtanh.f32 %v1193_v33  ;;  %v1151_v40 = vmul.f32 1.442695, %v1149_v63 }
0x1165   :  { %v1153_v28 = vmul.f32 1.442695, %v1150_v27 }
0x1166   :  { %1501 = vpow2.f32 %v1151_v40 }
0x1167   :  { %1503 = vpow2.f32 %v1196_v8 }
0x1168   :  { %1505 = vpow2.f32 %v1198_v15 }
0x116d   :  { %v1498_v61 = vpop.eup %1497 }
0x116e   :  { %1165 = vrot.lane.b32.xlu1 %v1498_v61, %s1601_s24  ;;  %v1500_v62 = vpop.eup %1499 }
0x1170   :  { %v1502_v43 = vpop.eup %1501 }
0x1171   :  { %v1155_v0 = vadd.f32 1.0, %v1502_v43  ;;  %v1504_v34 = vpop.eup %1503 }
0x1172   :  { %1206 = vrot.lane.b32.xlu1 %v1500_v62, %s1601_s24  ;;  %v1200_v35 = vadd.f32 1.0, %v1504_v34  ;;  %v1506_v2 = vpop.eup %1505 }
0x1173   :  { %1507 = vrcp.f32 %v1155_v0  ;;  %v1201_v5 = vadd.f32 1.0, %v1506_v2 }
0x1174   :  { %1509 = vrcp.f32 %v1200_v35 }
0x1175   :  { %1511 = vrcp.f32 %v1201_v5 }
0x117d   :  { %v1508_v3 = vpop.eup %1507 }
0x117e   :  { %v1510_v14 = vpop.eup %1509  ;;  %v1163_v18 = vmul.f32 %v1508_v3, %v1161_v13 }
0x117f   :  { %v1512_v9 = vpop.eup %1511 }
0x11e0   :  { %v1166_v4 = vpop.permute.xlu1 %1165 }
0x11e1   :  { %v1168_v50 = vmul.f32 %v1508_v3, %v1166_v4 }
0x11e3   :  { %1170 = vrot.lane.b32.xlu0 %v1168_v50, %s1601_s24 }
0x11e4   :  { %v1207_v6 = vpop.permute.xlu1 %1206 }
0x11e5   :  { %v1209_v7 = vmul.f32 %v1510_v14, %v1207_v6 }
0x11e7   :  { %1513 = vtanh.f32 %v1209_v7 }
0x11f1   :  { %v1514_v10 = vpop.eup %1513 }
0x11f2   :  { %v1211_v11 = vmul.f32 %v1514_v10, %v1512_v9 }
0x11f4   :  { %v1231_v25 = vmul.f32 %v1264_v23, %v1211_v11 }
0x11f6   :  { %v1232_v26 = vsel %vm1220_vm2, %v1231_v25, 0.0 }
0x1255   :  { %v1171_v19 = vpop.permute.xlu0 %1170 }
0x1256   :  { %v1173_v20 = vadd.f32 %v1171_v19, %v1163_v18 }
0x1258   :  { %1515 = vtanh.f32 %v1173_v20 }
0x1259   :  { %1517 = vpow2.f32 %v1153_v28 }
0x1262   :  { %v1516_v21 = vpop.eup %1515 }
0x1263   :  { %1176 = vrot.lane.b32.xlu0 %v1516_v21, %s1601_s24  ;;  %v1518_v31 = vpop.eup %1517 }
0x1264   :  { %v1156_v32 = vadd.f32 1.0, %v1518_v31 }
0x1266   :  { %1519 = vrcp.f32 %v1156_v32 }
0x1270   :  { %v1520_v37 = vpop.eup %1519 }
0x1282   :  { %1233 = vadd.xlane.f32.xlu0 %v1232_v26 }
0x12d5   :  { %v1177_v41 = vpop.permute.xlu0 %1176 }
0x12d6   :  { %v1179_v44 = vmul.f32 %v1520_v37, %v1177_v41 }
0x12d8   :  { %v1219_v45 = vmul.f32 %v1263_v42, %v1179_v44 }
0x12da   :  { %v1221_v46 = vsel %vm1220_vm2, %v1219_v45, 0.0 }
0x12db   :  { %1222 = vadd.xlane.f32.xlu1 %v1221_v46 }
0x130f   :  { %v1234_v47 = vpop.xlane.xlu0 %1233 }
0x1368   :  { %v1223_v49 = vpop.xlane.xlu1 %1222 }
0x1369   :  { %v1235_v51 = vadd.f32 %v1234_v47, %v1223_v49 }
0x136b   :  { %v1243_v52 = vadd.f32 %v1265_v48, %v1235_v51 }
0x136d   :  { %1245 = vst.msk [vmem:[%s1908_s8 - $0x6] sm:$0xc0] %vm1244_vm3, %v1243_v52 }
0x136e   :  { %1250 = vsyncpa [#allocation4], 1 }
0x136f   :  { %1251 = vsyncpa [#allocation6], 1 }

</bundles_post_ra>
